<compile_context>
chip_gen: v7x
topology: tpu7x:2x2x1
jax: 0.10.0
libtpu: 0.0.40
codegen_flags: <defaults>
</compile_context>

<pallas_src>
import jax
import jax.numpy as jnp
from jax.experimental import pallas as pl
from jax.experimental.pallas import tpu as pltpu

LANE = 128                       # TPU lane width (last-dim tile)
SUBLANE = 8                      # f32 sublane tile (second-to-last dim)
MAX_TM = 1024                    # upper cap on the batch tile
VMEM_LIMIT_BYTES = 48 * 1024 * 1024   # explicit scoped-VMEM limit (safe v5e/v6e/v7x)
VMEM_TILE_BUDGET = 36 * 1024 * 1024   # what the tiling math may consume (headroom kept)


def _round_up(x, m):
    return ((x + m - 1) // m) * m


# ------------------------------- kernels --------------------------------------
def _apply_mlp(x_ref, w1_ref, b1_ref, w2_ref, b2_ref, o_ref):
    """relu(x @ W1 + b1) @ W2 + b2 — bf16 MXU matmuls, f32 accumulation."""
    x = x_ref[...]
    if x.dtype != jnp.bfloat16:
        x = x.astype(jnp.bfloat16)   # f32-input fallback; prefer bf16 from the producer
    h = jnp.dot(x, w1_ref[...], preferred_element_type=jnp.float32) + b1_ref[...]
    h = jnp.maximum(h, 0.0).astype(jnp.bfloat16)
    o = jnp.dot(h, w2_ref[...], preferred_element_type=jnp.float32) + b2_ref[...]
    o_ref[...] = o.astype(o_ref.dtype)


def _triplet_kernel(x1_ref, x2_ref, x3_ref, w1_ref, b1_ref, w2_ref, b2_ref,
                    o1_ref, o2_ref, o3_ref):
    # Weight refs are handed straight to each branch and indexed at the dot
    # site (no hoisted whole-weight values -> less vreg pressure / spills).
    _apply_mlp(x1_ref, w1_ref, b1_ref, w2_ref, b2_ref, o1_ref)
    _apply_mlp(x2_ref, w1_ref, b1_ref, w2_ref, b2_ref, o2_ref)
    _apply_mlp(x3_ref, w1_ref, b1_ref, w2_ref, b2_ref, o3_ref)


def _single_kernel(x_ref, w1_ref, b1_ref, w2_ref, b2_ref, o_ref):
    _apply_mlp(x_ref, w1_ref, b1_ref, w2_ref, b2_ref, o_ref)


# ------------------------------- wrappers --------------------------------------
def _weight_specs(d_in_pad, d_hid, d_emb_pad):
    # Constant index maps -> weights never re-fetched across grid steps;
    # Buffered(1) drops the (useless) second pipeline buffer, halving their VMEM.
    const2 = lambda i: (0, 0)
    single = pl.Buffered(1)
    return [
        pl.BlockSpec((d_in_pad, d_hid), const2, pipeline_mode=single),
        pl.BlockSpec((1, d_hid), const2, pipeline_mode=single),
        pl.BlockSpec((d_hid, d_emb_pad), const2, pipeline_mode=single),
        pl.BlockSpec((1, d_emb_pad), const2, pipeline_mode=single),
    ]


def _batch_tiling(b, n_branch, d_in_pad, d_hid, d_emb_pad, x_itemsize, w_itemsize):
    """Derive TM from the VMEM budget (not a hard constant)."""
    b_pad = _round_up(max(b, SUBLANE), SUBLANE)
    # Resident (single-buffered) weight bytes.
    weight_bytes = (d_in_pad * d_hid + d_hid * d_emb_pad) * w_itemsize \
        + (d_hid + d_emb_pad) * 4
    stream_budget = max(VMEM_TILE_BUDGET - weight_bytes, 0)
    # Streamed bytes per batch row per grid step: inputs + f32 outputs, both
    # double-buffered by the pipeline, for n_branch branches.
    per_row = n_branch * (d_in_pad * x_itemsize + d_emb_pad * 4) * 2
    tm = (stream_budget // per_row) // SUBLANE * SUBLANE
    tm = int(max(SUBLANE, min(MAX_TM, tm, b_pad)))
    # Guarantee >=2 grid steps whenever the padded batch allows it so the
    # "parallel" batch axis can shard across v7x's two TensorCores.
    if b_pad > SUBLANE:
        tm = min(tm, _round_up((b_pad + 1) // 2, SUBLANE))
    b_pad = _round_up(b_pad, tm)
    return b_pad, tm


def _pad_2d(x, rows, cols):
    r, c = x.shape
    if r == rows and c == cols:
        return x
    return jnp.pad(x, ((0, rows - r), (0, cols - c)))


def triplet_net_forward(x1, x2, x3, params, *, d_emb):
    """Equivalent of TripletNet.forward_triple: returns (emb1, emb2, emb3)."""
    w1, b1, w2, b2 = params
    b = x1.shape[0]
    # Flatten NCHW -> (B, C*H*W), same as torch's x.view(B, -1).
    x1f, x2f, x3f = (v.reshape(b, -1) for v in (x1, x2, x3))
    d_in = x1f.shape[1]
    d_in_pad = w1.shape[0]        # init_params pads W1 rows to a multiple of 128
    d_hid = w1.shape[1]
    d_emb_pad = w2.shape[1]       # lane-dense (128-wide) output

    x_itemsize = jnp.dtype(x1f.dtype).itemsize
    w_itemsize = jnp.dtype(w1.dtype).itemsize
    b_pad, tm = _batch_tiling(b, 3, d_in_pad, d_hid, d_emb_pad, x_itemsize, w_itemsize)
    x1f, x2f, x3f = (_pad_2d(v, b_pad, d_in_pad) for v in (x1f, x2f, x3f))

    x_spec = pl.BlockSpec((tm, d_in_pad), lambda i: (i, 0))
    o_spec = pl.BlockSpec((tm, d_emb_pad), lambda i: (i, 0))
    out_sd = jax.ShapeDtypeStruct((b_pad, d_emb_pad), jnp.float32)

    flops = 3 * 2 * b_pad * (d_in_pad * d_hid + d_hid * d_emb_pad)
    bytes_accessed = (
        3 * b_pad * d_in_pad * x_itemsize       # activation reads
        + 3 * b_pad * d_emb_pad * 4             # output writes
        + (w1.size + w2.size) * w_itemsize      # resident weights
        + (b1.size + b2.size) * 4               # f32 biases
    )

    o1, o2, o3 = pl.pallas_call(
        _triplet_kernel,
        out_shape=(out_sd, out_sd, out_sd),
        grid=(b_pad // tm,),
        in_specs=[x_spec, x_spec, x_spec] + _weight_specs(d_in_pad, d_hid, d_emb_pad),
        out_specs=(o_spec, o_spec, o_spec),
        compiler_params=pltpu.CompilerParams(
            dimension_semantics=("parallel",),
            vmem_limit_bytes=VMEM_LIMIT_BYTES),
        cost_estimate=pl.CostEstimate(
            flops=flops, transcendentals=0, bytes_accessed=bytes_accessed),
    )(x1f, x2f, x3f, w1, b1, w2, b2)

    return o1[:b, :d_emb], o2[:b, :d_emb], o3[:b, :d_emb]


def embedding_net_pallas(x_flat, params, *, d_emb):
    """Single-branch embedding (TripletNet.forward(..., single=True) / get_embedding)."""
    w1, b1, w2, b2 = params
    b = x_flat.shape[0]
    d_in_pad = w1.shape[0]
    d_hid = w1.shape[1]
    d_emb_pad = w2.shape[1]

    x_itemsize = jnp.dtype(x_flat.dtype).itemsize
    w_itemsize = jnp.dtype(w1.dtype).itemsize
    b_pad, tm = _batch_tiling(b, 1, d_in_pad, d_hid, d_emb_pad, x_itemsize, w_itemsize)
    x_flat = _pad_2d(x_flat, b_pad, d_in_pad)

    out = pl.pallas_call(
        _single_kernel,
        out_shape=jax.ShapeDtypeStruct((b_pad, d_emb_pad), jnp.float32),
        grid=(b_pad // tm,),
        in_specs=[pl.BlockSpec((tm, d_in_pad), lambda i: (i, 0))]
        + _weight_specs(d_in_pad, d_hid, d_emb_pad),
        out_specs=pl.BlockSpec((tm, d_emb_pad), lambda i: (i, 0)),
        compiler_params=pltpu.CompilerParams(
            dimension_semantics=("parallel",),
            vmem_limit_bytes=VMEM_LIMIT_BYTES),
        cost_estimate=pl.CostEstimate(
            flops=2 * b_pad * (d_in_pad * d_hid + d_hid * d_emb_pad),
            transcendentals=0,
            bytes_accessed=b_pad * (d_in_pad * x_itemsize + d_emb_pad * 4)
            + (w1.size + w2.size) * w_itemsize + (b1.size + b2.size) * 4),
    )(x_flat, w1, b1, w2, b2)
    return out[:b, :d_emb]


def triplet_net_forward_single(x, params, *, d_emb):
    b = x.shape[0]
    return embedding_net_pallas(x.reshape(b, -1), params, d_emb=d_emb)


# ------------------------------- parameter init --------------------------------
def init_params(key, d_in, d_hid, d_emb):
    """Synthetic weights (no checkpoint load), stored kernel-ready:

    * W1, W2 in bfloat16 (MXU-native, half the weight DMA); biases f32.
    * W1 rows zero-padded so d_in is a multiple of 128 (lane-dense input).
    * W2/b2 zero-padded to a 128-lane-dense output width.
    """
    d_in_pad = _round_up(d_in, LANE)
    d_emb_pad = _round_up(max(d_emb, LANE), LANE)
    k1, k2, k3, k4 = jax.random.split(key, 4)
    w1 = jax.random.normal(k1, (d_in, d_hid), jnp.float32) * 0.02
    w1 = jnp.pad(w1, ((0, d_in_pad - d_in), (0, 0))).astype(jnp.bfloat16)
    b1 = jax.random.normal(k2, (1, d_hid), jnp.float32) * 0.01
    w2 = jax.random.normal(k3, (d_hid, d_emb), jnp.float32) * 0.02
    w2 = jnp.pad(w2, ((0, 0), (0, d_emb_pad - d_emb))).astype(jnp.bfloat16)
    b2 = jax.random.normal(k4, (1, d_emb), jnp.float32) * 0.01
    b2 = jnp.pad(b2, ((0, 0), (0, d_emb_pad - d_emb)))
    return w1, b1, w2, b2


# ------------------------------- reference (plain JAX) -------------------------
def _embedding_ref(x_flat, params, d_emb):
    w1, b1, w2, b2 = params
    d_in_pad = w1.shape[0]
    x = jnp.pad(x_flat, ((0, 0), (0, d_in_pad - x_flat.shape[1]))).astype(jnp.bfloat16)
    h = jnp.maximum(jnp.dot(x, w1, preferred_element_type=jnp.float32) + b1, 0.0)
    o = jnp.dot(h.astype(jnp.bfloat16), w2, preferred_element_type=jnp.float32) + b2
    return o[:, :d_emb]


if __name__ == "__main__":
    key = jax.random.PRNGKey(0)
    k_p, k1, k2, k3 = jax.random.split(key, 4)

    # Small NCHW inputs: batch=2, channels=4, spatial=16x16
    B, C, H, W = 2, 4, 16, 16
    D_in = C * H * W          # 1024
    D_hid = 128
    D_emb = 32

    params = init_params(k_p, D_in, D_hid, D_emb)

    x1 = jax.random.normal(k1, (B, C, H, W), jnp.float32)
    x2 = jax.random.normal(k2, (B, C, H, W), jnp.float32)
    x3 = jax.random.normal(k3, (B, C, H, W), jnp.float32)

    fwd = jax.jit(triplet_net_forward, static_argnames=("d_emb",))
    o1, o2, o3 = fwd(x1, x2, x3, params, d_emb=D_emb)
    jax.block_until_ready((o1, o2, o3))

    # Correctness check against a plain-JAX reference using the same bf16 weights.
    r1 = _embedding_ref(x1.reshape(B, -1), params, D_emb)
    r2 = _embedding_ref(x2.reshape(B, -1), params, D_emb)
    r3 = _embedding_ref(x3.reshape(B, -1), params, D_emb)
    assert o1.shape == (B, D_emb) and o2.shape == (B, D_emb) and o3.shape == (B, D_emb)
    assert jnp.allclose(o1, r1, atol=2e-2)
    assert jnp.allclose(o2, r2, atol=2e-2)
    assert jnp.allclose(o3, r3, atol=2e-2)

    # bf16-activation path (producer emits bf16; halves the dominant DMA).
    p1, p2, p3 = fwd(x1.astype(jnp.bfloat16), x2.astype(jnp.bfloat16),
                     x3.astype(jnp.bfloat16), params, d_emb=D_emb)
    jax.block_until_ready((p1, p2, p3))
    assert jnp.allclose(p1, r1, atol=2e-2)
    assert jnp.allclose(p2, r2, atol=2e-2)
    assert jnp.allclose(p3, r3, atol=2e-2)

    # Also exercise the single-input path (forward(..., single=True) / get_embedding).
    fwd_single = jax.jit(triplet_net_forward_single, static_argnames=("d_emb",))
    os_ = jax.block_until_ready(fwd_single(x1, params, d_emb=D_emb))
    assert os_.shape == (B, D_emb)
    assert jnp.allclose(os_, r1, atol=2e-2)

    print("KERNEL_OK")
</pallas_src>

<mosaic_0001>
module attributes {stable_mosaic.version = 11 : i64} {
  func.func @_triplet_kernel(%arg0: i32, %arg1: memref<8x1024xf32, #tpu.memory_space<vmem>>, %arg2: memref<8x1024xf32, #tpu.memory_space<vmem>>, %arg3: memref<8x1024xf32, #tpu.memory_space<vmem>>, %arg4: memref<1024x128xbf16, #tpu.memory_space<vmem>>, %arg5: memref<1x128xf32, #tpu.memory_space<vmem>>, %arg6: memref<128x128xbf16, #tpu.memory_space<vmem>>, %arg7: memref<1x128xf32, #tpu.memory_space<vmem>>, %arg8: memref<8x128xf32, #tpu.memory_space<vmem>>, %arg9: memref<8x128xf32, #tpu.memory_space<vmem>>, %arg10: memref<8x128xf32, #tpu.memory_space<vmem>>) attributes {dimension_semantics = [#tpu.dimension_semantics<parallel>], iteration_bounds = array<i64: 1>, scalar_prefetch = 0 : i64, scratch_operands = 0 : i64, tpu.core_type = #tpu.core_type<tc>, window_params = [{transform_indices = @transform_0, window_bounds = array<i64: 8, 1024>}, {transform_indices = @transform_1, window_bounds = array<i64: 8, 1024>}, {transform_indices = @transform_2, window_bounds = array<i64: 8, 1024>}, {pipeline_mode = #tpu.pipeline_mode<synchronous>, transform_indices = @transform_3, window_bounds = array<i64: 1024, 128>}, {pipeline_mode = #tpu.pipeline_mode<synchronous>, transform_indices = @transform_4, window_bounds = array<i64: 1, 128>}, {pipeline_mode = #tpu.pipeline_mode<synchronous>, transform_indices = @transform_5, window_bounds = array<i64: 128, 128>}, {pipeline_mode = #tpu.pipeline_mode<synchronous>, transform_indices = @transform_6, window_bounds = array<i64: 1, 128>}, {transform_indices = @transform_7, window_bounds = array<i64: 8, 128>}, {transform_indices = @transform_8, window_bounds = array<i64: 8, 128>}, {transform_indices = @transform_9, window_bounds = array<i64: 8, 128>}]} {
    %c0 = arith.constant 0 : index
    %c0_0 = arith.constant 0 : index
    %0 = vector.load %arg1[%c0, %c0_0] : memref<8x1024xf32, #tpu.memory_space<vmem>>, vector<8x1024xf32>
    %1 = arith.truncf %0 : vector<8x1024xf32> to vector<8x1024xbf16>
    %c0_1 = arith.constant 0 : index
    %c0_2 = arith.constant 0 : index
    %2 = vector.load %arg4[%c0_1, %c0_2] : memref<1024x128xbf16, #tpu.memory_space<vmem>>, vector<1024x128xbf16>
    %cst = arith.constant dense<0.000000e+00> : vector<8x128xf32>
    %3 = tpu.matmul %1, %2, %cst {dimension_numbers = #tpu.dot_dimension_numbers<[1], [0], [0], [1], [0, 0, 1, 1], [], []>} : vector<8x1024xbf16>, vector<1024x128xbf16>, vector<8x128xf32> -> vector<8x128xf32>
    %c0_3 = arith.constant 0 : index
    %c0_4 = arith.constant 0 : index
    %4 = vector.load %arg5[%c0_3, %c0_4] : memref<1x128xf32, #tpu.memory_space<vmem>>, vector<1x128xf32>
    %5 = vector.broadcast %4 : vector<1x128xf32> to vector<8x128xf32>
    %6 = arith.addf %3, %5 : vector<8x128xf32>
    %cst_5 = arith.constant 0.000000e+00 : f32
    %7 = vector.broadcast %cst_5 : f32 to vector<8x128xf32>
    %8 = arith.maximumf %6, %7 : vector<8x128xf32>
    %9 = arith.truncf %8 : vector<8x128xf32> to vector<8x128xbf16>
    %c0_6 = arith.constant 0 : index
    %c0_7 = arith.constant 0 : index
    %10 = vector.load %arg6[%c0_6, %c0_7] : memref<128x128xbf16, #tpu.memory_space<vmem>>, vector<128x128xbf16>
    %cst_8 = arith.constant dense<0.000000e+00> : vector<8x128xf32>
    %11 = tpu.matmul %9, %10, %cst_8 {dimension_numbers = #tpu.dot_dimension_numbers<[1], [0], [0], [1], [0, 0, 1, 1], [], []>} : vector<8x128xbf16>, vector<128x128xbf16>, vector<8x128xf32> -> vector<8x128xf32>
    %c0_9 = arith.constant 0 : index
    %c0_10 = arith.constant 0 : index
    %12 = vector.load %arg7[%c0_9, %c0_10] : memref<1x128xf32, #tpu.memory_space<vmem>>, vector<1x128xf32>
    %13 = vector.broadcast %12 : vector<1x128xf32> to vector<8x128xf32>
    %14 = arith.addf %11, %13 : vector<8x128xf32>
    %c0_11 = arith.constant 0 : index
    %c0_12 = arith.constant 0 : index
    %15 = vector.load %arg8[%c0_11, %c0_12] : memref<8x128xf32, #tpu.memory_space<vmem>>, vector<8x128xf32>
    tpu.vector_store %arg8[%c0_11, %c0_12], %14 {strides = array<i32>} : memref<8x128xf32, #tpu.memory_space<vmem>>, vector<8x128xf32>,
    %c0_13 = arith.constant 0 : index
    %c0_14 = arith.constant 0 : index
    %16 = vector.load %arg2[%c0_13, %c0_14] : memref<8x1024xf32, #tpu.memory_space<vmem>>, vector<8x1024xf32>
    %17 = arith.truncf %16 : vector<8x1024xf32> to vector<8x1024xbf16>
    %c0_15 = arith.constant 0 : index
    %c0_16 = arith.constant 0 : index
    %18 = vector.load %arg4[%c0_15, %c0_16] : memref<1024x128xbf16, #tpu.memory_space<vmem>>, vector<1024x128xbf16>
    %cst_17 = arith.constant dense<0.000000e+00> : vector<8x128xf32>
    %19 = tpu.matmul %17, %18, %cst_17 {dimension_numbers = #tpu.dot_dimension_numbers<[1], [0], [0], [1], [0, 0, 1, 1], [], []>} : vector<8x1024xbf16>, vector<1024x128xbf16>, vector<8x128xf32> -> vector<8x128xf32>
    %c0_18 = arith.constant 0 : index
    %c0_19 = arith.constant 0 : index
    %20 = vector.load %arg5[%c0_18, %c0_19] : memref<1x128xf32, #tpu.memory_space<vmem>>, vector<1x128xf32>
    %21 = vector.broadcast %20 : vector<1x128xf32> to vector<8x128xf32>
    %22 = arith.addf %19, %21 : vector<8x128xf32>
    %cst_20 = arith.constant 0.000000e+00 : f32
    %23 = vector.broadcast %cst_20 : f32 to vector<8x128xf32>
    %24 = arith.maximumf %22, %23 : vector<8x128xf32>
    %25 = arith.truncf %24 : vector<8x128xf32> to vector<8x128xbf16>
    %c0_21 = arith.constant 0 : index
    %c0_22 = arith.constant 0 : index
    %26 = vector.load %arg6[%c0_21, %c0_22] : memref<128x128xbf16, #tpu.memory_space<vmem>>, vector<128x128xbf16>
    %cst_23 = arith.constant dense<0.000000e+00> : vector<8x128xf32>
    %27 = tpu.matmul %25, %26, %cst_23 {dimension_numbers = #tpu.dot_dimension_numbers<[1], [0], [0], [1], [0, 0, 1, 1], [], []>} : vector<8x128xbf16>, vector<128x128xbf16>, vector<8x128xf32> -> vector<8x128xf32>
    %c0_24 = arith.constant 0 : index
    %c0_25 = arith.constant 0 : index
    %28 = vector.load %arg7[%c0_24, %c0_25] : memref<1x128xf32, #tpu.memory_space<vmem>>, vector<1x128xf32>
    %29 = vector.broadcast %28 : vector<1x128xf32> to vector<8x128xf32>
    %30 = arith.addf %27, %29 : vector<8x128xf32>
    %c0_26 = arith.constant 0 : index
    %c0_27 = arith.constant 0 : index
    %31 = vector.load %arg9[%c0_26, %c0_27] : memref<8x128xf32, #tpu.memory_space<vmem>>, vector<8x128xf32>
    tpu.vector_store %arg9[%c0_26, %c0_27], %30 {strides = array<i32>} : memref<8x128xf32, #tpu.memory_space<vmem>>, vector<8x128xf32>,
    %c0_28 = arith.constant 0 : index
    %c0_29 = arith.constant 0 : index
    %32 = vector.load %arg3[%c0_28, %c0_29] : memref<8x1024xf32, #tpu.memory_space<vmem>>, vector<8x1024xf32>
    %33 = arith.truncf %32 : vector<8x1024xf32> to vector<8x1024xbf16>
    %c0_30 = arith.constant 0 : index
    %c0_31 = arith.constant 0 : index
    %34 = vector.load %arg4[%c0_30, %c0_31] : memref<1024x128xbf16, #tpu.memory_space<vmem>>, vector<1024x128xbf16>
    %cst_32 = arith.constant dense<0.000000e+00> : vector<8x128xf32>
    %35 = tpu.matmul %33, %34, %cst_32 {dimension_numbers = #tpu.dot_dimension_numbers<[1], [0], [0], [1], [0, 0, 1, 1], [], []>} : vector<8x1024xbf16>, vector<1024x128xbf16>, vector<8x128xf32> -> vector<8x128xf32>
    %c0_33 = arith.constant 0 : index
    %c0_34 = arith.constant 0 : index
    %36 = vector.load %arg5[%c0_33, %c0_34] : memref<1x128xf32, #tpu.memory_space<vmem>>, vector<1x128xf32>
    %37 = vector.broadcast %36 : vector<1x128xf32> to vector<8x128xf32>
    %38 = arith.addf %35, %37 : vector<8x128xf32>
    %cst_35 = arith.constant 0.000000e+00 : f32
    %39 = vector.broadcast %cst_35 : f32 to vector<8x128xf32>
    %40 = arith.maximumf %38, %39 : vector<8x128xf32>
    %41 = arith.truncf %40 : vector<8x128xf32> to vector<8x128xbf16>
    %c0_36 = arith.constant 0 : index
    %c0_37 = arith.constant 0 : index
    %42 = vector.load %arg6[%c0_36, %c0_37] : memref<128x128xbf16, #tpu.memory_space<vmem>>, vector<128x128xbf16>
    %cst_38 = arith.constant dense<0.000000e+00> : vector<8x128xf32>
    %43 = tpu.matmul %41, %42, %cst_38 {dimension_numbers = #tpu.dot_dimension_numbers<[1], [0], [0], [1], [0, 0, 1, 1], [], []>} : vector<8x128xbf16>, vector<128x128xbf16>, vector<8x128xf32> -> vector<8x128xf32>
    %c0_39 = arith.constant 0 : index
    %c0_40 = arith.constant 0 : index
    %44 = vector.load %arg7[%c0_39, %c0_40] : memref<1x128xf32, #tpu.memory_space<vmem>>, vector<1x128xf32>
    %45 = vector.broadcast %44 : vector<1x128xf32> to vector<8x128xf32>
    %46 = arith.addf %43, %45 : vector<8x128xf32>
    %c0_41 = arith.constant 0 : index
    %c0_42 = arith.constant 0 : index
    %47 = vector.load %arg10[%c0_41, %c0_42] : memref<8x128xf32, #tpu.memory_space<vmem>>, vector<8x128xf32>
    tpu.vector_store %arg10[%c0_41, %c0_42], %46 {strides = array<i32>} : memref<8x128xf32, #tpu.memory_space<vmem>>, vector<8x128xf32>,
    return
  }
  func.func @transform_0(%arg0: i32) -> (i32, i32) {
    %c0_i32 = arith.constant 0 : i32
    %c0_i32_0 = arith.constant 0 : i32
    return %arg0, %c0_i32 : i32, i32
  }
  func.func @transform_1(%arg0: i32) -> (i32, i32) {
    %c0_i32 = arith.constant 0 : i32
    %c0_i32_0 = arith.constant 0 : i32
    return %arg0, %c0_i32 : i32, i32
  }
  func.func @transform_2(%arg0: i32) -> (i32, i32) {
    %c0_i32 = arith.constant 0 : i32
    %c0_i32_0 = arith.constant 0 : i32
    return %arg0, %c0_i32 : i32, i32
  }
  func.func @transform_3(%arg0: i32) -> (i32, i32) {
    %c0_i32 = arith.constant 0 : i32
    %c0_i32_0 = arith.constant 0 : i32
    %c0_i32_1 = arith.constant 0 : i32
    return %c0_i32, %c0_i32_0 : i32, i32
  }
  func.func @transform_4(%arg0: i32) -> (i32, i32) {
    %c0_i32 = arith.constant 0 : i32
    %c0_i32_0 = arith.constant 0 : i32
    %c0_i32_1 = arith.constant 0 : i32
    return %c0_i32, %c0_i32_0 : i32, i32
  }
  func.func @transform_5(%arg0: i32) -> (i32, i32) {
    %c0_i32 = arith.constant 0 : i32
    %c0_i32_0 = arith.constant 0 : i32
    %c0_i32_1 = arith.constant 0 : i32
    return %c0_i32, %c0_i32_0 : i32, i32
  }
  func.func @transform_6(%arg0: i32) -> (i32, i32) {
    %c0_i32 = arith.constant 0 : i32
    %c0_i32_0 = arith.constant 0 : i32
    %c0_i32_1 = arith.constant 0 : i32
    return %c0_i32, %c0_i32_0 : i32, i32
  }
  func.func @transform_7(%arg0: i32) -> (i32, i32) {
    %c0_i32 = arith.constant 0 : i32
    %c0_i32_0 = arith.constant 0 : i32
    return %arg0, %c0_i32 : i32, i32
  }
  func.func @transform_8(%arg0: i32) -> (i32, i32) {
    %c0_i32 = arith.constant 0 : i32
    %c0_i32_0 = arith.constant 0 : i32
    return %arg0, %c0_i32 : i32, i32
  }
  func.func @transform_9(%arg0: i32) -> (i32, i32) {
    %c0_i32 = arith.constant 0 : i32
    %c0_i32_0 = arith.constant 0 : i32
    return %arg0, %c0_i32 : i32, i32
  }
}

</mosaic_0001>

<bundles_post_ra>
// kernel: triplet_net_forward.1
= control target key start
LH: loop header
LB: loop body
LE: loop exit
PB: predicated region body
PF: predicated region fallthrough
CT: control target
= control target key end

     0   :  { %vm3261_vm0 = vmmov 0   ;;  %s4095_s3 = inlined_call_operand.vmem [shape: bf16[1024,128], index: 3, kind: input, shape index: {}]   ;;  %s4096_s0 = inlined_call_operand.vmem [shape: f32[8,1024], index: 0, kind: input, shape index: {}]   ;;  %s4097_s5 = inlined_call_operand.vmem [shape: bf16[128,128], index: 5, kind: input, shape index: {}]   ;;  %s4098_s1 = inlined_call_operand.vmem [shape: f32[8,1024], index: 1, kind: input, shape index: {}]   ;;  %s4099_s4 = inlined_call_operand.vmem [shape: f32[1,128], index: 4, kind: input, shape index: {}]   ;;  %s4100_s2 = inlined_call_operand.vmem [shape: f32[8,1024], index: 2, kind: input, shape index: {}]   ;;  %s4101_s6 = inlined_call_operand.vmem [shape: f32[1,128], index: 6, kind: input, shape index: {}]   ;;  %s4102_s7 = inlined_call_operand.vmem [shape: f32[8,128], index: 7, kind: output, shape index: {0}]   ;;  %s4103_s8 = inlined_call_operand.vmem [shape: f32[8,128], index: 8, kind: output, shape index: {1}]   ;;  %s4104_s9 = inlined_call_operand.vmem [shape: f32[8,128], index: 9, kind: output, shape index: {2}]  }
   0x1   :  { %v3044_v0 = vld [vmem:[%s4095_s3 + $0x40] sm:$0xff]   ;;  %v3048_v4 = vld [vmem:[%s4095_s3 + $0x48] sm:$0xff]   ;;  %v3052_v8 = vld [vmem:[%s4095_s3 + $0x50] sm:$0xff]  }
   0x2   :  { %v3045_v1 = vld [vmem:[%s4095_s3 + $0xc0] sm:$0xff]   ;;  %2691 = vmatprep.subr.bf16.mxu0 %v3044_v0  ;;  %v3049_v5 = vld [vmem:[%s4095_s3 + $0xc8] sm:$0xff]   ;;  %v3053_v9 = vld [vmem:[%s4095_s3 + $0xd0] sm:$0xff]  }
   0x3   :  { %v3046_v2 = vld [vmem:[%s4095_s3] sm:$0xff]   ;;  %2713 = vmatprep.subr.bf16.mxu1 %v3045_v1  ;;  %v3050_v6 = vld [vmem:[%s4095_s3 + $0x8] sm:$0xff]   ;;  %v3054_v10 = vld [vmem:[%s4095_s3 + $0x10] sm:$0xff]  }
   0x4   :  { %v3047_v3 = vld [vmem:[%s4095_s3 + $0x80] sm:$0xff]   ;;  %2692 = vmatpush3.bf16.msra.mxu0 %v3046_v2  ;;  %v3051_v7 = vld [vmem:[%s4095_s3 + $0x88] sm:$0xff]   ;;  %v3055_v11 = vld [vmem:[%s4095_s3 + $0x90] sm:$0xff]  }
   0x5   :  { %2714 = vmatpush3.bf16.msra.mxu1 %v3047_v3  ;;  %2693 = vmatprep.subr.bf16.mxu0 %v3048_v4  ;;  %v3056_v12 = vld [vmem:[%s4095_s3 + $0x58] sm:$0xff]   ;;  %v3060_v16 = vld [vmem:[%s4095_s3 + $0x60] sm:$0xff]   ;;  %v3064_v20 = vld [vmem:[%s4095_s3 + $0x68] sm:$0xff]  }
   0x6   :  { %2715 = vmatprep.subr.bf16.mxu1 %v3049_v5  ;;  %v3057_v13 = vld [vmem:[%s4095_s3 + $0xd8] sm:$0xff]   ;;  %v3061_v17 = vld [vmem:[%s4095_s3 + $0xe0] sm:$0xff]   ;;  %v3065_v21 = vld [vmem:[%s4095_s3 + $0xe8] sm:$0xff]  }
   0x7   :  { %v3058_v14 = vld [vmem:[%s4095_s3 + $0x18] sm:$0xff]   ;;  %v3062_v18 = vld [vmem:[%s4095_s3 + $0x20] sm:$0xff]   ;;  %v3066_v22 = vld [vmem:[%s4095_s3 + $0x28] sm:$0xff]  }
   0x8   :  { %2694 = vmatpush3.bf16.msra.mxu0 %v3050_v6  ;;  %v3059_v15 = vld [vmem:[%s4095_s3 + $0x98] sm:$0xff]   ;;  %v3063_v19 = vld [vmem:[%s4095_s3 + $0xa0] sm:$0xff]   ;;  %v3067_v23 = vld [vmem:[%s4095_s3 + $0xa8] sm:$0xff]  }
   0x9   :  { %2716 = vmatpush3.bf16.msra.mxu1 %v3051_v7  ;;  %2695 = vmatprep.subr.bf16.mxu0 %v3052_v8  ;;  %v3068_v24 = vld [vmem:[%s4095_s3 + $0x70] sm:$0xff]   ;;  %v3072_v28 = vld [vmem:[%s4095_s3 + $0x78] sm:$0xff]   ;;  %v31_v32 = vld [vmem:[%s4096_s0 + $0x8] sm:$0xff] }
   0xa   :  { %2717 = vmatprep.subr.bf16.mxu1 %v3053_v9  ;;  %v3069_v25 = vld [vmem:[%s4095_s3 + $0xf0] sm:$0xff]   ;;  %v3073_v29 = vld [vmem:[%s4095_s3 + $0xf8] sm:$0xff]   ;;  %v30_v34 = vld [vmem:[%s4096_s0] sm:$0xff]  ;;  %v39_v35 = vpack.c.bf16 %v31_v32, %v31_v32 }
   0xb   :  { %v3070_v26 = vld [vmem:[%s4095_s3 + $0x30] sm:$0xff]   ;;  %v3074_v30 = vld [vmem:[%s4095_s3 + $0x38] sm:$0xff]   ;;  %v38_v37 = vpack.c.bf16 %v30_v34, %v30_v34  ;;  %v3076_v40 = vld [vmem:[%s4095_s3 + $0x140] sm:$0xff]  }
   0xc   :  { %2696 = vmatpush3.bf16.msra.mxu0 %v3054_v10  ;;  %v3071_v27 = vld [vmem:[%s4095_s3 + $0xb0] sm:$0xff]   ;;  %v3075_v31 = vld [vmem:[%s4095_s3 + $0xb8] sm:$0xff]   ;;  %597 = vmatprep.mubr.bf16.mxu0 %v39_v35  ;;  %v3077_v41 = vld [vmem:[%s4095_s3 + $0x1c0] sm:$0xff]  }
   0xd   :  { %2718 = vmatpush3.bf16.msra.mxu1 %v3055_v11  ;;  %2697 = vmatprep.subr.bf16.mxu0 %v3056_v12  ;;  %v33_v33 = vld [vmem:[%s4096_s0 + $0x18] sm:$0xff]  ;;  %v32_v38 = vld [vmem:[%s4096_s0 + $0x10] sm:$0xff]  ;;  %v3078_v42 = vld [vmem:[%s4095_s3 + $0x100] sm:$0xff]  }
   0xe   :  { %2719 = vmatprep.subr.bf16.mxu1 %v3057_v13  ;;  %v41_v36 = vpack.c.bf16 %v33_v33, %v33_v33  ;;  %v40_v39 = vpack.c.bf16 %v32_v38, %v32_v38  ;;  %v3079_v43 = vld [vmem:[%s4095_s3 + $0x180] sm:$0xff]   ;;  %v3080_v44 = vld [vmem:[%s4095_s3 + $0x148] sm:$0xff]   ;;  %v3084_v48 = vld [vmem:[%s4095_s3 + $0x150] sm:$0xff]  }
   0xf   :  { %v3081_v45 = vld [vmem:[%s4095_s3 + $0x1c8] sm:$0xff]   ;;  %v3085_v49 = vld [vmem:[%s4095_s3 + $0x1d0] sm:$0xff]   ;;  %v3088_v52 = vld [vmem:[%s4095_s3 + $0x158] sm:$0xff]  }
  0x10   :  { %2698 = vmatpush3.bf16.msra.mxu0 %v3058_v14  ;;  %637 = vmatprep.mubr.bf16.mxu1 %v41_v36  ;;  %v3082_v46 = vld [vmem:[%s4095_s3 + $0x108] sm:$0xff]   ;;  %v3086_v50 = vld [vmem:[%s4095_s3 + $0x110] sm:$0xff]   ;;  %v3089_v53 = vld [vmem:[%s4095_s3 + $0x1d8] sm:$0xff]  }
  0x11   :  { %2720 = vmatpush3.bf16.msra.mxu1 %v3059_v15  ;;  %2699 = vmatprep.subr.bf16.mxu0 %v3060_v16  ;;  %v3083_v47 = vld [vmem:[%s4095_s3 + $0x188] sm:$0xff]   ;;  %v3087_v51 = vld [vmem:[%s4095_s3 + $0x190] sm:$0xff]   ;;  %v3090_v54 = vld [vmem:[%s4095_s3 + $0x118] sm:$0xff]  }
  0x12   :  { %2721 = vmatprep.subr.bf16.mxu1 %v3061_v17  ;;  %v3091_v55 = vld [vmem:[%s4095_s3 + $0x198] sm:$0xff]   ;;  %v3092_v56 = vld [vmem:[%s4095_s3 + $0x160] sm:$0xff]   ;;  %v3096_v60 = vld [vmem:[%s4095_s3 + $0x168] sm:$0xff]  }
  0x13   :  { %v3093_v57 = vld [vmem:[%s4095_s3 + $0x1e0] sm:$0xff]   ;;  %v3097_v61 = vld [vmem:[%s4095_s3 + $0x1e8] sm:$0xff]   ;;  %v3100_v0 = vld [vmem:[%s4095_s3 + $0x170] sm:$0xff]  }
  0x14   :  { %2700 = vmatpush3.bf16.msra.mxu0 %v3062_v18  ;;  %v3094_v58 = vld [vmem:[%s4095_s3 + $0x120] sm:$0xff]   ;;  %v3098_v62 = vld [vmem:[%s4095_s3 + $0x128] sm:$0xff]   ;;  %v3101_v1 = vld [vmem:[%s4095_s3 + $0x1f0] sm:$0xff]  }
  0x15   :  { %2722 = vmatpush3.bf16.msra.mxu1 %v3063_v19  ;;  %2701 = vmatprep.subr.bf16.mxu0 %v3064_v20  ;;  %v3095_v59 = vld [vmem:[%s4095_s3 + $0x1a0] sm:$0xff]   ;;  %v3099_v63 = vld [vmem:[%s4095_s3 + $0x1a8] sm:$0xff]   ;;  %v3102_v2 = vld [vmem:[%s4095_s3 + $0x130] sm:$0xff]   ;;  %v3260_v19 = vmov 0.0  }
  0x16   :  { %2723 = vmatprep.subr.bf16.mxu1 %v3065_v21  ;;  %v3103_v3 = vld [vmem:[%s4095_s3 + $0x1b0] sm:$0xff]   ;;  %v3104_v4 = vld [vmem:[%s4095_s3 + $0x178] sm:$0xff]   ;;  %v35_v8 = vld [vmem:[%s4096_s0 + $0x28] sm:$0xff] }
  0x17   :  { %v3105_v5 = vld [vmem:[%s4095_s3 + $0x1f8] sm:$0xff]   ;;  %v43_v10 = vpack.c.bf16 %v35_v8, %v35_v8  ;;  %v34_v12 = vld [vmem:[%s4096_s0 + $0x20] sm:$0xff]  ;;  %v36_v13 = vld [vmem:[%s4096_s0 + $0x30] sm:$0xff] }
  0x18   :  { %2702 = vmatpush3.bf16.msra.mxu0 %v3066_v22  ;;  %v3106_v6 = vld [vmem:[%s4095_s3 + $0x138] sm:$0xff]   ;;  %v42_v14 = vpack.c.bf16 %v34_v12, %v34_v12  ;;  %v44_v15 = vpack.c.bf16 %v36_v13, %v36_v13  ;;  %v3109_v16 = vld [vmem:[%s4095_s3 + $0x40] sm:$0xff]   ;;  %v3112_v18 = vld [vmem:[%s4095_s3 + $0x48] sm:$0xff]  }
  0x19   :  { %2724 = vmatpush3.bf16.msra.mxu1 %v3067_v23  ;;  %2703 = vmatprep.subr.bf16.mxu0 %v3068_v24  ;;  %v3107_v7 = vld [vmem:[%s4095_s3 + $0x1b8] sm:$0xff]   ;;  %v3110_v17 = vld [vmem:[%s4095_s3] sm:$0xff]   ;;  %v3111_v21 = vld [vmem:[%s4097_s5 + $0x8] sm:$0xff]  }
  0x1a   :  { %2725 = vmatprep.subr.bf16.mxu1 %v3069_v25  ;;  %v37_v9 = vld [vmem:[%s4096_s0 + $0x38] sm:$0xff]  ;;  %v3108_v20 = vld [vmem:[%s4097_s5] sm:$0xff]   ;;  %v3113_v22 = vld [vmem:[%s4095_s3 + $0x8] sm:$0xff]  }
  0x1b   :  { %v45_v11 = vpack.c.bf16 %v37_v9, %v37_v9  ;;  %v3115_v23 = vld [vmem:[%s4095_s3 + $0x50] sm:$0xff]   ;;  %v3123_v32 = vld [vmem:[%s4097_s5 + $0x28] sm:$0xff]   ;;  %v3129_v38 = vld [vmem:[%s4097_s5 + $0x38] sm:$0xff]  }
  0x1c   :  { %2704 = vmatpush3.bf16.msra.mxu0 %v3070_v26  ;;  %v3114_v24 = vld [vmem:[%s4097_s5 + $0x10] sm:$0xff]   ;;  %v3118_v26 = vld [vmem:[%s4095_s3 + $0x58] sm:$0xff]   ;;  %v3124_v33 = vld [vmem:[%s4095_s3 + $0x68] sm:$0xff]  }
  0x1d   :  { %2726 = vmatpush3.bf16.msra.mxu1 %v3071_v27  ;;  %2705 = vmatprep.subr.bf16.mxu0 %v3072_v28  ;;  %v3116_v25 = vld [vmem:[%s4095_s3 + $0x10] sm:$0xff]   ;;  %v3117_v27 = vld [vmem:[%s4097_s5 + $0x18] sm:$0xff]   ;;  %v3125_v34 = vld [vmem:[%s4095_s3 + $0x28] sm:$0xff]  }
  0x1e   :  { %2727 = vmatprep.subr.bf16.mxu1 %v3073_v29  ;;  %v3119_v28 = vld [vmem:[%s4095_s3 + $0x18] sm:$0xff]   ;;  %v3121_v29 = vld [vmem:[%s4095_s3 + $0x60] sm:$0xff]   ;;  %v3126_v35 = vld [vmem:[%s4097_s5 + $0x30] sm:$0xff]  }
  0x1f   :  { %v3127_v36 = vld [vmem:[%s4095_s3 + $0x70] sm:$0xff]  }
  0x20   :  { %2706 = vmatpush3.bf16.msra.mxu0 %v3074_v30  ;;  %v3120_v30 = vld [vmem:[%s4097_s5 + $0x20] sm:$0xff]  }
  0x21   :  { %2728 = vmatpush3.bf16.msra.mxu1 %v3075_v31  ;;  %2735 = vmatprep.subr.bf16.mxu0 %v3076_v40  ;;  %v3122_v31 = vld [vmem:[%s4095_s3 + $0x20] sm:$0xff]   ;;  %v3131_v40 = vld [vmem:[%s4095_s3 + $0x38] sm:$0xff]  }
  0x22   :  { %2757 = vmatprep.subr.bf16.mxu1 %v3077_v41  ;;  %v3132_v41 = vld [vmem:[%s4095_s3 + $0xc0] sm:$0xff]  }
  0x23   :  { %598 = vmatmul.mubr.bf16.vlgmr.msra.gmra.mrb[0].mxu0 %v38_v37  ;;  %v3128_v37 = vld [vmem:[%s4095_s3 + $0x30] sm:$0xff]  }
  0x24   :  { %638 = vmatmul.mubr.bf16.vlgmr.msra.gmra.mrb[0].mxu1 %v40_v39  ;;  %2736 = vmatpush3.bf16.msra.mxu0 %v3078_v42  ;;  %v3130_v39 = vld [vmem:[%s4095_s3 + $0x78] sm:$0xff]   ;;  %v840_v42 = vld [vmem:[%s4098_s1 + $0x8] sm:$0xff] }
  0x25   :  { %2758 = vmatpush3.bf16.msra.mxu1 %v3079_v43  ;;  %2737 = vmatprep.subr.bf16.mxu0 %v3080_v44  ;;  %v848_v43 = vpack.c.bf16 %v840_v42, %v840_v42  ;;  %v3134_v44 = vld [vmem:[%s4095_s3 + $0x140] sm:$0xff]   ;;  %v3153_v42 = vld [vmem:[%s4095_s3 + $0xa8] sm:$0xff]  }
  0x26   :  { %2759 = vmatprep.subr.bf16.mxu1 %v3081_v45  ;;  %677 = vmatprep.mubr.bf16.mxu0 %v43_v10  ;;  %v839_v45 = vld [vmem:[%s4098_s1] sm:$0xff] }
  0x27   :  { %717 = vmatprep.mubr.bf16.mxu1 %v45_v11 }
  0x28   :  { %2738 = vmatpush3.bf16.msra.mxu0 %v3082_v46  ;;  %v847_v46 = vpack.c.bf16 %v839_v45, %v839_v45  ;;  %v3160_v45 = vld [vmem:[%s4095_s3 + $0xf8] sm:$0xff]  }
  0x29   :  { %2760 = vmatpush3.bf16.msra.mxu1 %v3083_v47  ;;  %2739 = vmatprep.subr.bf16.mxu0 %v3084_v48  ;;  %v3135_v47 = vld [vmem:[%s4095_s3 + $0x100] sm:$0xff]   ;;  %v3138_v48 = vld [vmem:[%s4095_s3 + $0x148] sm:$0xff]  }
  0x2a   :  { %2761 = vmatprep.subr.bf16.mxu1 %v3085_v49  ;;  %v3139_v49 = vld [vmem:[%s4095_s3 + $0x108] sm:$0xff]  }
  0x2c   :  { %2740 = vmatpush3.bf16.msra.mxu0 %v3086_v50  ;;  %v3142_v50 = vld [vmem:[%s4095_s3 + $0x150] sm:$0xff]  }
  0x2d   :  { %2762 = vmatpush3.bf16.msra.mxu1 %v3087_v51  ;;  %2741 = vmatprep.subr.bf16.mxu0 %v3088_v52  ;;  %v3143_v51 = vld [vmem:[%s4095_s3 + $0x110] sm:$0xff]   ;;  %v3146_v52 = vld [vmem:[%s4095_s3 + $0x158] sm:$0xff]  }
  0x2e   :  { %2763 = vmatprep.subr.bf16.mxu1 %v3089_v53  ;;  %v3147_v53 = vld [vmem:[%s4095_s3 + $0x118] sm:$0xff]  }
  0x30   :  { %2742 = vmatpush3.bf16.msra.mxu0 %v3090_v54  ;;  %v3150_v54 = vld [vmem:[%s4095_s3 + $0x160] sm:$0xff]  }
  0x31   :  { %2764 = vmatpush3.bf16.msra.mxu1 %v3091_v55  ;;  %2743 = vmatprep.subr.bf16.mxu0 %v3092_v56  ;;  %v3151_v55 = vld [vmem:[%s4095_s3 + $0x120] sm:$0xff]   ;;  %v3154_v56 = vld [vmem:[%s4095_s3 + $0x168] sm:$0xff]  }
  0x32   :  { %2765 = vmatprep.subr.bf16.mxu1 %v3093_v57  ;;  %v3155_v57 = vld [vmem:[%s4095_s3 + $0x128] sm:$0xff]  }
  0x34   :  { %2744 = vmatpush3.bf16.msra.mxu0 %v3094_v58  ;;  %v3158_v58 = vld [vmem:[%s4095_s3 + $0x170] sm:$0xff]  }
  0x35   :  { %2766 = vmatpush3.bf16.msra.mxu1 %v3095_v59  ;;  %2745 = vmatprep.subr.bf16.mxu0 %v3096_v60  ;;  %v3159_v59 = vld [vmem:[%s4095_s3 + $0x130] sm:$0xff]   ;;  %v3162_v60 = vld [vmem:[%s4095_s3 + $0x178] sm:$0xff]  }
  0x36   :  { %2767 = vmatprep.subr.bf16.mxu1 %v3097_v61  ;;  %v3163_v61 = vld [vmem:[%s4095_s3 + $0x138] sm:$0xff]  }
  0x38   :  { %2746 = vmatpush3.bf16.msra.mxu0 %v3098_v62  ;;  %v844_v62 = vld [vmem:[%s4098_s1 + $0x28] sm:$0xff] }
  0x39   :  { %2768 = vmatpush3.bf16.msra.mxu1 %v3099_v63  ;;  %2747 = vmatprep.subr.bf16.mxu0 %v3100_v0  ;;  %v852_v63 = vpack.c.bf16 %v844_v62, %v844_v62  ;;  %v843_v0 = vld [vmem:[%s4098_s1 + $0x20] sm:$0xff]  ;;  %v3175_v62 = vld [vmem:[%s4095_s3 + $0x1a8] sm:$0xff]  }
  0x3a   :  { %2769 = vmatprep.subr.bf16.mxu1 %v3101_v1  ;;  %v851_v1 = vpack.c.bf16 %v843_v0, %v843_v0  ;;  %v3177_v0 = vld [vmem:[%s4095_s3 + $0x1b0] sm:$0xff]  }
  0x3c   :  { %2748 = vmatpush3.bf16.msra.mxu0 %v3102_v2 }
  0x3d   :  { %2770 = vmatpush3.bf16.msra.mxu1 %v3103_v3  ;;  %2749 = vmatprep.subr.bf16.mxu0 %v3104_v4  ;;  %v3679_v4 = vld [vmem:[%s4099_s4] ss:$0 sm:$0xff] }
  0x3e   :  { %2771 = vmatprep.subr.bf16.mxu1 %v3105_v5 }
  0x40   :  { %2750 = vmatpush3.bf16.msra.mxu0 %v3106_v6 }
  0x41   :  { %2772 = vmatpush3.bf16.msra.mxu1 %v3107_v7  ;;  %2982 = vmatprep.subr.bf16.mxu0 %v3260_v19 }
  0x42   :  { %2788 = vmatprep.subr.bf16.mxu1 %v3109_v16 }
  0x43   :  { %678 = vmatmul.mubr.bf16.vlgmr.msra.gmra.mrb[4].mxu0 %v42_v14 }
  0x44   :  { %718 = vmatmul.mubr.bf16.vlgmr.msra.gmra.mrb[4].mxu1 %v44_v15  ;;  %2983 = vmatpush3.bf16.msra.mxu0 %v3108_v20 }
  0x45   :  { %2789 = vmatpush3.bf16.msra.mxu1 %v3110_v17  ;;  %2984 = vmatprep.subr.bf16.mxu0 %v3260_v19 }
  0x46   :  { %2790 = vmatprep.subr.bf16.mxu1 %v3112_v18  ;;  %2998 = vmatprep.mubr.msk.bf16.mxu0 %vm3261_vm0, %v3260_v19 }
  0x47   :  { %1406 = vmatprep.mubr.bf16.mxu1 %v848_v43  ;;  %v3156_v43 = vld [vmem:[%s4095_s3 + $0xf0] sm:$0xff]  }
  0x48   :  { %2985 = vmatpush3.bf16.msra.mxu0 %v3111_v21 }
  0x49   :  { %2791 = vmatpush3.bf16.msra.mxu1 %v3113_v22  ;;  %2986 = vmatprep.subr.bf16.mxu0 %v3260_v19 }
  0x4a   :  { %2792 = vmatprep.subr.bf16.mxu1 %v3115_v23 }
  0x4c   :  { %2987 = vmatpush3.bf16.msra.mxu0 %v3114_v24 }
  0x4d   :  { %2793 = vmatpush3.bf16.msra.mxu1 %v3116_v25  ;;  %2988 = vmatprep.subr.bf16.mxu0 %v3260_v19 }
  0x4e   :  { %2794 = vmatprep.subr.bf16.mxu1 %v3118_v26 }
  0x50   :  { %2989 = vmatpush3.bf16.msra.mxu0 %v3117_v27 }
  0x51   :  { %2795 = vmatpush3.bf16.msra.mxu1 %v3119_v28  ;;  %2990 = vmatprep.subr.bf16.mxu0 %v3260_v19  ;;  %v842_v28 = vld [vmem:[%s4098_s1 + $0x18] sm:$0xff] }
  0x52   :  { %2796 = vmatprep.subr.bf16.mxu1 %v3121_v29 }
  0x54   :  { %2991 = vmatpush3.bf16.msra.mxu0 %v3120_v30  ;;  %v3133_v30 = vld [vmem:[%s4095_s3 + $0x80] sm:$0xff]  }
  0x55   :  { %2797 = vmatpush3.bf16.msra.mxu1 %v3122_v31  ;;  %2992 = vmatprep.subr.bf16.mxu0 %v3260_v19  ;;  %v850_v31 = vpack.c.bf16 %v842_v28, %v842_v28  ;;  %v3191_v28 = vld [vmem:[%s4095_s3 + $0x18] sm:$0xff]  }
  0x56   :  { %2798 = vmatprep.subr.bf16.mxu1 %v3124_v33  ;;  %v3136_v33 = vld [vmem:[%s4095_s3 + $0xc8] sm:$0xff]  }
  0x58   :  { %2993 = vmatpush3.bf16.msra.mxu0 %v3123_v32 }
  0x59   :  { %2994 = vmatprep.subr.bf16.mxu0 %v3260_v19  ;;  %2799 = vmatpush3.bf16.msra.mxu1 %v3125_v34  ;;  %v3137_v34 = vld [vmem:[%s4095_s3 + $0x88] sm:$0xff]  }
  0x5a   :  { %2800 = vmatprep.subr.bf16.mxu1 %v3127_v36  ;;  %v3141_v36 = vld [vmem:[%s4095_s3 + $0x90] sm:$0xff]  }
  0x5c   :  { %2995 = vmatpush3.bf16.msra.mxu0 %v3126_v35  ;;  %v3140_v35 = vld [vmem:[%s4095_s3 + $0xd0] sm:$0xff]  }
  0x5d   :  { %2996 = vmatprep.subr.bf16.mxu0 %v3260_v19  ;;  %2801 = vmatpush3.bf16.msra.mxu1 %v3128_v37  ;;  %v3144_v37 = vld [vmem:[%s4095_s3 + $0xd8] sm:$0xff]  }
  0x5e   :  { %2802 = vmatprep.subr.bf16.mxu1 %v3130_v39  ;;  %v3148_v39 = vld [vmem:[%s4095_s3 + $0xe0] sm:$0xff]  }
  0x60   :  { %2997 = vmatpush3.bf16.msra.mxu0 %v3129_v38  ;;  %v3145_v38 = vld [vmem:[%s4095_s3 + $0x98] sm:$0xff]  }
  0x61   :  { %2803 = vmatpush3.bf16.msra.mxu1 %v3131_v40  ;;  %2810 = vmatprep.subr.bf16.mxu0 %v3132_v41  ;;  %v3149_v40 = vld [vmem:[%s4095_s3 + $0xa0] sm:$0xff]   ;;  %v3152_v41 = vld [vmem:[%s4095_s3 + $0xe8] sm:$0xff]  }
  0x62   :  { %2832 = vmatprep.subr.bf16.mxu1 %v3134_v44  ;;  %v3157_v44 = vld [vmem:[%s4095_s3 + $0xb0] sm:$0xff]  }
  0x64   :  { %1407 = vmatmul.mubr.bf16.vlgmr.msra.gmra.mrb[8].mxu1 %v847_v46  ;;  %v3161_v46 = vld [vmem:[%s4095_s3 + $0xb8] sm:$0xff]  }
  0x65   :  { %2833 = vmatpush3.bf16.msra.mxu1 %v3135_v47  ;;  %1486 = vmatprep.mubr.bf16.mxu1 %v852_v63  ;;  %v841_v47 = vld [vmem:[%s4098_s1 + $0x10] sm:$0xff] }
  0x66   :  { %2834 = vmatprep.subr.bf16.mxu1 %v3138_v48  ;;  %v3164_v48 = vld [vmem:[%s4095_s3 + $0x1c0] sm:$0xff]   ;;  %v3176_v63 = vld [vmem:[%s4095_s3 + $0x1f0] sm:$0xff]  }
  0x69   :  { %2835 = vmatpush3.bf16.msra.mxu1 %v3139_v49  ;;  %v846_v49 = vld [vmem:[%s4098_s1 + $0x38] sm:$0xff] }
  0x6a   :  { %2836 = vmatprep.subr.bf16.mxu1 %v3142_v50  ;;  %v849_v50 = vpack.c.bf16 %v841_v47, %v841_v47  ;;  %v3207_v47 = vld [vmem:[%s4095_s3 + $0x100] sm:$0xff]  }
  0x6d   :  { %2837 = vmatpush3.bf16.msra.mxu1 %v3143_v51  ;;  %v3165_v51 = vld [vmem:[%s4095_s3 + $0x180] sm:$0xff]  }
  0x6e   :  { %2838 = vmatprep.subr.bf16.mxu1 %v3146_v52  ;;  %v854_v52 = vpack.c.bf16 %v846_v49, %v846_v49  ;;  %v3211_v49 = vld [vmem:[%s4095_s3 + $0x108] sm:$0xff]  }
  0x71   :  { %2839 = vmatpush3.bf16.msra.mxu1 %v3147_v53  ;;  %v3166_v53 = vld [vmem:[%s4095_s3 + $0x1c8] sm:$0xff]  }
  0x72   :  { %2840 = vmatprep.subr.bf16.mxu1 %v3150_v54  ;;  %v3167_v54 = vld [vmem:[%s4095_s3 + $0x188] sm:$0xff]  }
  0x75   :  { %2841 = vmatpush3.bf16.msra.mxu1 %v3151_v55  ;;  %v3168_v55 = vld [vmem:[%s4095_s3 + $0x1d0] sm:$0xff]  }
  0x76   :  { %2842 = vmatprep.subr.bf16.mxu1 %v3154_v56  ;;  %v3169_v56 = vld [vmem:[%s4095_s3 + $0x190] sm:$0xff]  }
  0x79   :  { %2843 = vmatpush3.bf16.msra.mxu1 %v3155_v57  ;;  %v3170_v57 = vld [vmem:[%s4095_s3 + $0x1d8] sm:$0xff]  }
  0x7a   :  { %2844 = vmatprep.subr.bf16.mxu1 %v3158_v58  ;;  %v3171_v58 = vld [vmem:[%s4095_s3 + $0x198] sm:$0xff]  }
  0x7d   :  { %2845 = vmatpush3.bf16.msra.mxu1 %v3159_v59  ;;  %v3172_v59 = vld [vmem:[%s4095_s3 + $0x1e0] sm:$0xff]  }
  0x7e   :  { %2846 = vmatprep.subr.bf16.mxu1 %v3162_v60  ;;  %v3173_v60 = vld [vmem:[%s4095_s3 + $0x1a0] sm:$0xff]  }
  0x81   :  { %2847 = vmatpush3.bf16.msra.mxu1 %v3163_v61  ;;  %v3174_v61 = vld [vmem:[%s4095_s3 + $0x1e8] sm:$0xff]  }
  0x82   :  { %3002 = vmatprep.subr.bf16.mxu1 %v3260_v19 }
  0x84   :  { %1487 = vmatmul.mubr.bf16.vlgmr.msra.gmra.mrb[12].mxu1 %v851_v1  ;;  %v3178_v1 = vld [vmem:[%s4095_s3 + $0x1f8] sm:$0xff]  }
  0x85   :  { %3018 = vmatprep.mubr.msk.bf16.mxu1 %vm3261_vm0, %v3260_v19 }
  0xf6   :  { %v2707_v2 = vpop.f32.mrb[0].mxu0 }
  0xf7   :  { %v2729_v3 = vpop.f32.mrb[0].mxu1  ;;  %v2708_v5 = vpop.f32.mrb[1].mxu0 }
  0xf8   :  { %v2730_v6 = vpop.f32.mrb[1].mxu1  ;;  %v2709_v7 = vadd.f32 %v2708_v5, %v2707_v2  ;;  %v2710_v9 = vpop.f32.mrb[2].mxu0  ;;  %v3179_v2 = vld [vmem:[%s4095_s3 + $0x1b8] sm:$0xff]  }
  0xf9   :  { %v2731_v8 = vadd.f32 %v2730_v6, %v2729_v3  ;;  %v2732_v10 = vpop.f32.mrb[2].mxu1  ;;  %v2711_v11 = vpop.f32.mrb[3].mxu0  ;;  %v845_v3 = vld [vmem:[%s4098_s1 + $0x30] sm:$0xff] }
  0xfa   :  { %v2733_v12 = vpop.f32.mrb[3].mxu1  ;;  %v600_v13 = vadd.f32 %v2709_v7, %v3679_v4  ;;  %v853_v5 = vpack.c.bf16 %v845_v3, %v845_v3 }
  0xfc   :  { %v640_v14 = vadd.f32 %v2731_v8, %v600_v13 }
 0x116   :  { %v2751_v15 = vpop.f32.mrb[4].mxu0 }
 0x117   :  { %v2773_v16 = vpop.f32.mrb[4].mxu1  ;;  %v2752_v17 = vpop.f32.mrb[5].mxu0 }
 0x118   :  { %v2753_v18 = vadd.f32 %v2752_v17, %v2751_v15  ;;  %v2774_v20 = vpop.f32.mrb[5].mxu1  ;;  %v2754_v21 = vpop.f32.mrb[6].mxu0  ;;  %v3180_v15 = vld [vmem:[%s4097_s5] sm:$0xff]  }
 0x119   :  { %v2775_v22 = vadd.f32 %v2774_v20, %v2773_v16  ;;  %v2776_v23 = vpop.f32.mrb[6].mxu1  ;;  %v2755_v24 = vpop.f32.mrb[7].mxu0  ;;  %v3181_v16 = vld [vmem:[%s4095_s3 + $0x40] sm:$0xff]   ;;  %v3184_v20 = vld [vmem:[%s4095_s3 + $0x48] sm:$0xff]   ;;  %3003 = vmatpush3.bf16.msra.mxu1 %v3180_v15 }
 0x11a   :  { %v680_v25 = vadd.f32 %v2753_v18, %v640_v14  ;;  %v2777_v26 = vpop.f32.mrb[7].mxu1  ;;  %v3182_v17 = vld [vmem:[%s4095_s3] sm:$0xff]   ;;  %v3183_v21 = vld [vmem:[%s4097_s5 + $0x8] sm:$0xff]   ;;  %3004 = vmatprep.subr.bf16.mxu1 %v3260_v19  ;;  %v3187_v23 = vld [vmem:[%s4095_s3 + $0x50] sm:$0xff]  }
 0x11b   :  { %v3186_v24 = vld [vmem:[%s4097_s5 + $0x10] sm:$0xff]   ;;  %v3190_v26 = vld [vmem:[%s4095_s3 + $0x58] sm:$0xff]  }
 0x11c   :  { %v720_v27 = vadd.f32 %v2775_v22, %v680_v25  ;;  %v3185_v22 = vld [vmem:[%s4095_s3 + $0x8] sm:$0xff]   ;;  %v3188_v25 = vld [vmem:[%s4095_s3 + $0x10] sm:$0xff]  }
 0x11d   :  { %3005 = vmatpush3.bf16.msra.mxu1 %v3183_v21 }
 0x11e   :  { %v725_v29 = vmax.f32 %v720_v27, 0.0  ;;  %3006 = vmatprep.subr.bf16.mxu1 %v3260_v19  ;;  %v3189_v27 = vld [vmem:[%s4097_s5 + $0x18] sm:$0xff]  }
 0x120   :  { %v726_v32 = vpack.c.bf16 %v725_v29, %v725_v29  ;;  %v3193_v29 = vld [vmem:[%s4095_s3 + $0x60] sm:$0xff]  }
 0x121   :  { %3007 = vmatpush3.bf16.msra.mxu1 %v3186_v24 }
 0x122   :  { %2999 = vmatmul.mubr.bf16.vlgmr.msra.gmra.mrb[8].mxu0 %v726_v32  ;;  %3008 = vmatprep.subr.bf16.mxu1 %v3260_v19  ;;  %v3196_v32 = vld [vmem:[%s4095_s3 + $0x68] sm:$0xff]  }
 0x123   :  { %2811 = vmatpush3.bf16.msra.mxu0 %v3133_v30  ;;  %1446 = vmatprep.mubr.bf16.mxu0 %v850_v31  ;;  %v3192_v30 = vld [vmem:[%s4097_s5 + $0x20] sm:$0xff]  }
 0x124   :  { %2812 = vmatprep.subr.bf16.mxu0 %v3136_v33  ;;  %v3194_v31 = vld [vmem:[%s4095_s3 + $0x20] sm:$0xff]   ;;  %v3195_v33 = vld [vmem:[%s4097_s5 + $0x28] sm:$0xff]  }
 0x125   :  { %3009 = vmatpush3.bf16.msra.mxu1 %v3189_v27 }
 0x126   :  { %3010 = vmatprep.subr.bf16.mxu1 %v3260_v19 }
 0x127   :  { %2813 = vmatpush3.bf16.msra.mxu0 %v3137_v34  ;;  %v3197_v34 = vld [vmem:[%s4095_s3 + $0x28] sm:$0xff]  }
 0x128   :  { %2814 = vmatprep.subr.bf16.mxu0 %v3140_v35  ;;  %v3198_v35 = vld [vmem:[%s4097_s5 + $0x30] sm:$0xff]  }
 0x129   :  { %3011 = vmatpush3.bf16.msra.mxu1 %v3192_v30  ;;  %v3212_v30 = vld [vmem:[%s4095_s3 + $0xd0] sm:$0xff]  }
 0x12a   :  { %3012 = vmatprep.subr.bf16.mxu1 %v3260_v19 }
 0x12b   :  { %2815 = vmatpush3.bf16.msra.mxu0 %v3141_v36  ;;  %v3199_v36 = vld [vmem:[%s4095_s3 + $0x70] sm:$0xff]  }
 0x12c   :  { %2816 = vmatprep.subr.bf16.mxu0 %v3144_v37  ;;  %v3200_v37 = vld [vmem:[%s4095_s3 + $0x30] sm:$0xff]  }
 0x12d   :  { %3013 = vmatpush3.bf16.msra.mxu1 %v3195_v33  ;;  %v3217_v33 = vld [vmem:[%s4095_s3 + $0x98] sm:$0xff]  }
 0x12e   :  { %3014 = vmatprep.subr.bf16.mxu1 %v3260_v19 }
 0x12f   :  { %2817 = vmatpush3.bf16.msra.mxu0 %v3145_v38  ;;  %v3201_v38 = vld [vmem:[%s4097_s5 + $0x38] sm:$0xff]  }
 0x130   :  { %2818 = vmatprep.subr.bf16.mxu0 %v3148_v39  ;;  %v3202_v39 = vld [vmem:[%s4095_s3 + $0x78] sm:$0xff]  }
 0x131   :  { %3015 = vmatpush3.bf16.msra.mxu1 %v3198_v35  ;;  %v3221_v35 = vld [vmem:[%s4095_s3 + $0xa0] sm:$0xff]  }
 0x132   :  { %3016 = vmatprep.subr.bf16.mxu1 %v3260_v19 }
 0x133   :  { %2819 = vmatpush3.bf16.msra.mxu0 %v3149_v40  ;;  %v3203_v40 = vld [vmem:[%s4095_s3 + $0x38] sm:$0xff]  }
 0x134   :  { %2820 = vmatprep.subr.bf16.mxu0 %v3152_v41  ;;  %v3204_v41 = vld [vmem:[%s4095_s3 + $0xc0] sm:$0xff]  }
 0x135   :  { %3017 = vmatpush3.bf16.msra.mxu1 %v3201_v38  ;;  %v3228_v38 = vld [vmem:[%s4095_s3 + $0xf0] sm:$0xff]  }
 0x136   :  { %2907 = vmatprep.subr.bf16.mxu1 %v3204_v41  ;;  %v3233_v41 = vld [vmem:[%s4095_s3 + $0xb8] sm:$0xff]  }
 0x137   :  { %2821 = vmatpush3.bf16.msra.mxu0 %v3153_v42  ;;  %v2804_v6 = vpop.f32.mrb[8].mxu1  ;;  %v1649_v42 = vld [vmem:[%s4100_s2 + $0x8] sm:$0xff] }
 0x138   :  { %2822 = vmatprep.subr.bf16.mxu0 %v3156_v43  ;;  %v2805_v7 = vpop.f32.mrb[9].mxu1  ;;  %v1657_v43 = vpack.c.bf16 %v1649_v42, %v1649_v42  ;;  %v1650_v42 = vld [vmem:[%s4100_s2 + $0x10] sm:$0xff] }
 0x139   :  { %v3787_v8 = vadd.f32 %v2805_v7, %v2804_v6  ;;  %v2807_v9 = vpop.f32.mrb[10].mxu1 }
 0x13a   :  { %v2808_v10 = vpop.f32.mrb[11].mxu1 }
 0x13b   :  { %2823 = vmatpush3.bf16.msra.mxu0 %v3157_v44  ;;  %v3206_v44 = vld [vmem:[%s4095_s3 + $0x140] sm:$0xff]   ;;  %v1409_v10 = vadd.f32 %v3787_v8, %v3679_v4 }
 0x13c   :  { %2824 = vmatprep.subr.bf16.mxu0 %v3160_v45  ;;  %v1648_v45 = vld [vmem:[%s4100_s2] sm:$0xff] }
 0x13d   :  { %v3205_v4 = vld [vmem:[%s4095_s3 + $0x80] sm:$0xff]  }
 0x13f   :  { %2825 = vmatpush3.bf16.msra.mxu0 %v3161_v46  ;;  %v1656_v46 = vpack.c.bf16 %v1648_v45, %v1648_v45  ;;  %v1658_v45 = vpack.c.bf16 %v1650_v42, %v1650_v42 }
 0x140   :  { %2854 = vmatprep.subr.bf16.mxu0 %v3164_v48  ;;  %v3210_v48 = vld [vmem:[%s4095_s3 + $0x148] sm:$0xff]  }
 0x142   :  { %1447 = vmatmul.mubr.bf16.vlgmr.msra.gmra.mrb[12].mxu0 %v849_v50  ;;  %v3214_v50 = vld [vmem:[%s4095_s3 + $0x150] sm:$0xff]  }
 0x143   :  { %2855 = vmatpush3.bf16.msra.mxu0 %v3165_v51  ;;  %1526 = vmatprep.mubr.bf16.mxu0 %v854_v52  ;;  %v3215_v51 = vld [vmem:[%s4095_s3 + $0x110] sm:$0xff]   ;;  %v3218_v52 = vld [vmem:[%s4095_s3 + $0x158] sm:$0xff]  }
 0x144   :  { %2856 = vmatprep.subr.bf16.mxu0 %v3166_v53  ;;  %v3219_v53 = vld [vmem:[%s4095_s3 + $0x118] sm:$0xff]  }
 0x147   :  { %2857 = vmatpush3.bf16.msra.mxu0 %v3167_v54  ;;  %v3222_v54 = vld [vmem:[%s4095_s3 + $0x160] sm:$0xff]  }
 0x148   :  { %2858 = vmatprep.subr.bf16.mxu0 %v3168_v55  ;;  %v3223_v55 = vld [vmem:[%s4095_s3 + $0x120] sm:$0xff]  }
 0x14b   :  { %2859 = vmatpush3.bf16.msra.mxu0 %v3169_v56  ;;  %v3226_v56 = vld [vmem:[%s4095_s3 + $0x168] sm:$0xff]  }
 0x14c   :  { %2860 = vmatprep.subr.bf16.mxu0 %v3170_v57  ;;  %v3227_v57 = vld [vmem:[%s4095_s3 + $0x128] sm:$0xff]  }
 0x14f   :  { %2861 = vmatpush3.bf16.msra.mxu0 %v3171_v58  ;;  %v3230_v58 = vld [vmem:[%s4095_s3 + $0x170] sm:$0xff]  }
 0x150   :  { %2862 = vmatprep.subr.bf16.mxu0 %v3172_v59  ;;  %v3231_v59 = vld [vmem:[%s4095_s3 + $0x130] sm:$0xff]  }
 0x153   :  { %2863 = vmatpush3.bf16.msra.mxu0 %v3173_v60  ;;  %v3234_v60 = vld [vmem:[%s4095_s3 + $0x178] sm:$0xff]  }
 0x154   :  { %2864 = vmatprep.subr.bf16.mxu0 %v3174_v61  ;;  %v3235_v61 = vld [vmem:[%s4095_s3 + $0x138] sm:$0xff]  }
 0x157   :  { %2865 = vmatpush3.bf16.msra.mxu0 %v3175_v62  ;;  %v2848_v11 = vpop.f32.mrb[12].mxu1  ;;  %v1653_v62 = vld [vmem:[%s4100_s2 + $0x28] sm:$0xff] }
 0x158   :  { %2866 = vmatprep.subr.bf16.mxu0 %v3176_v63  ;;  %v2849_v12 = vpop.f32.mrb[13].mxu1  ;;  %v1661_v63 = vpack.c.bf16 %v1653_v62, %v1653_v62  ;;  %v1654_v62 = vld [vmem:[%s4100_s2 + $0x30] sm:$0xff] }
 0x159   :  { %v3789_v13 = vadd.f32 %v2849_v12, %v2848_v11  ;;  %v2851_v14 = vpop.f32.mrb[14].mxu1 }
 0x15a   :  { %v2852_v18 = vpop.f32.mrb[15].mxu1 }
 0x15b   :  { %2867 = vmatpush3.bf16.msra.mxu0 %v3177_v0  ;;  %v1652_v0 = vld [vmem:[%s4100_s2 + $0x20] sm:$0xff] }
 0x15c   :  { %2868 = vmatprep.subr.bf16.mxu0 %v3178_v1  ;;  %v1660_v1 = vpack.c.bf16 %v1652_v0, %v1652_v0 }
 0x15f   :  { %2869 = vmatpush3.bf16.msra.mxu0 %v3179_v2  ;;  %v3939_v2 = vld [vmem:[%s4101_s6] ss:$0 sm:$0xff] }
 0x160   :  { %2885 = vmatprep.subr.bf16.mxu0 %v3181_v16 }
 0x162   :  { %1527 = vmatmul.mubr.bf16.vlgmr.msra.gmra.mrb[16].mxu0 %v853_v5 }
 0x163   :  { %2886 = vmatpush3.bf16.msra.mxu0 %v3182_v17  ;;  %2215 = vmatprep.mubr.bf16.mxu0 %v1657_v43  ;;  %v3236_v43 = vld [vmem:[%s4095_s3 + $0x1c0] sm:$0xff]  }
 0x164   :  { %2887 = vmatprep.subr.bf16.mxu0 %v3184_v20 }
 0x167   :  { %2888 = vmatpush3.bf16.msra.mxu0 %v3185_v22 }
 0x168   :  { %2889 = vmatprep.subr.bf16.mxu0 %v3187_v23 }
 0x16b   :  { %2890 = vmatpush3.bf16.msra.mxu0 %v3188_v25 }
 0x16c   :  { %2891 = vmatprep.subr.bf16.mxu0 %v3190_v26  ;;  %v1651_v26 = vld [vmem:[%s4100_s2 + $0x18] sm:$0xff] }
 0x16d   :  { %v1659_v8 = vpack.c.bf16 %v1651_v26, %v1651_v26 }
 0x16f   :  { %2892 = vmatpush3.bf16.msra.mxu0 %v3191_v28 }
 0x170   :  { %2893 = vmatprep.subr.bf16.mxu0 %v3193_v29  ;;  %v3209_v29 = vld [vmem:[%s4095_s3 + $0x88] sm:$0xff]  }
 0x173   :  { %2894 = vmatpush3.bf16.msra.mxu0 %v3194_v31  ;;  %v3213_v31 = vld [vmem:[%s4095_s3 + $0x90] sm:$0xff]  }
 0x174   :  { %2895 = vmatprep.subr.bf16.mxu0 %v3196_v32  ;;  %v3216_v32 = vld [vmem:[%s4095_s3 + $0xd8] sm:$0xff]  }
 0x177   :  { %2896 = vmatpush3.bf16.msra.mxu0 %v3197_v34  ;;  %v3220_v34 = vld [vmem:[%s4095_s3 + $0xe0] sm:$0xff]  }
 0x178   :  { %2897 = vmatprep.subr.bf16.mxu0 %v3199_v36  ;;  %v3224_v36 = vld [vmem:[%s4095_s3 + $0xe8] sm:$0xff]  }
 0x17b   :  { %2898 = vmatpush3.bf16.msra.mxu0 %v3200_v37  ;;  %v3225_v37 = vld [vmem:[%s4095_s3 + $0xa8] sm:$0xff]  }
 0x17c   :  { %2899 = vmatprep.subr.bf16.mxu0 %v3202_v39  ;;  %v3229_v39 = vld [vmem:[%s4095_s3 + $0xb0] sm:$0xff]  }
 0x17f   :  { %2900 = vmatpush3.bf16.msra.mxu0 %v3203_v40  ;;  %v3232_v40 = vld [vmem:[%s4095_s3 + $0xf8] sm:$0xff]  }
 0x180   :  { %2929 = vmatprep.subr.bf16.mxu0 %v3206_v44  ;;  %v1655_v44 = vld [vmem:[%s4100_s2 + $0x38] sm:$0xff] }
 0x182   :  { %2216 = vmatmul.mubr.bf16.vlgmr.msra.gmra.mrb[20].mxu0 %v1656_v46  ;;  %v3237_v46 = vld [vmem:[%s4095_s3 + $0x180] sm:$0xff]  }
 0x183   :  { %2930 = vmatpush3.bf16.msra.mxu0 %v3207_v47  ;;  %2295 = vmatprep.mubr.bf16.mxu0 %v1661_v63  ;;  %v1663_v47 = vpack.c.bf16 %v1655_v44, %v1655_v44  ;;  %v1662_v63 = vpack.c.bf16 %v1654_v62, %v1654_v62 }
 0x184   :  { %2931 = vmatprep.subr.bf16.mxu0 %v3210_v48  ;;  %v3238_v48 = vld [vmem:[%s4095_s3 + $0x1c8] sm:$0xff]  }
 0x187   :  { %2932 = vmatpush3.bf16.msra.mxu0 %v3211_v49  ;;  %v3239_v49 = vld [vmem:[%s4095_s3 + $0x188] sm:$0xff]  }
 0x188   :  { %2933 = vmatprep.subr.bf16.mxu0 %v3214_v50  ;;  %v3240_v50 = vld [vmem:[%s4095_s3 + $0x1d0] sm:$0xff]  }
 0x18b   :  { %2934 = vmatpush3.bf16.msra.mxu0 %v3215_v51  ;;  %v3241_v51 = vld [vmem:[%s4095_s3 + $0x190] sm:$0xff]  }
 0x18c   :  { %2935 = vmatprep.subr.bf16.mxu0 %v3218_v52  ;;  %v3242_v52 = vld [vmem:[%s4095_s3 + $0x1d8] sm:$0xff]  }
 0x18f   :  { %2936 = vmatpush3.bf16.msra.mxu0 %v3219_v53  ;;  %v3243_v53 = vld [vmem:[%s4095_s3 + $0x198] sm:$0xff]  }
 0x190   :  { %2937 = vmatprep.subr.bf16.mxu0 %v3222_v54  ;;  %v3244_v54 = vld [vmem:[%s4095_s3 + $0x1e0] sm:$0xff]  }
 0x193   :  { %2938 = vmatpush3.bf16.msra.mxu0 %v3223_v55  ;;  %v3245_v55 = vld [vmem:[%s4095_s3 + $0x1a0] sm:$0xff]  }
 0x194   :  { %2939 = vmatprep.subr.bf16.mxu0 %v3226_v56  ;;  %v3246_v56 = vld [vmem:[%s4095_s3 + $0x1e8] sm:$0xff]  }
 0x197   :  { %2940 = vmatpush3.bf16.msra.mxu0 %v3227_v57  ;;  %v3247_v57 = vld [vmem:[%s4095_s3 + $0x1a8] sm:$0xff]  }
 0x198   :  { %2941 = vmatprep.subr.bf16.mxu0 %v3230_v58  ;;  %v3248_v58 = vld [vmem:[%s4095_s3 + $0x1f0] sm:$0xff]  }
 0x19b   :  { %2942 = vmatpush3.bf16.msra.mxu0 %v3231_v59  ;;  %v3249_v59 = vld [vmem:[%s4095_s3 + $0x1b0] sm:$0xff]  }
 0x19c   :  { %2943 = vmatprep.subr.bf16.mxu0 %v3234_v60  ;;  %v3250_v60 = vld [vmem:[%s4095_s3 + $0x1f8] sm:$0xff]  }
 0x19f   :  { %2944 = vmatpush3.bf16.msra.mxu0 %v3235_v61  ;;  %v3251_v61 = vld [vmem:[%s4095_s3 + $0x1b8] sm:$0xff]  }
 0x1a0   :  { %3022 = vmatprep.subr.bf16.mxu0 %v3260_v19 }
 0x1a2   :  { %2296 = vmatmul.mubr.bf16.vlgmr.msra.gmra.mrb[24].mxu0 %v1660_v1 }
 0x1a3   :  { %3038 = vmatprep.mubr.msk.bf16.mxu0 %vm3261_vm0, %v3260_v19 }
 0x1f5   :  { %v832_v3 = vpop.f32.mrb[8].mxu0 }
 0x1f6   :  { %v833_v5 = vadd.f32 %v3939_v2, %v832_v3  ;;  %v3000_v6 = vpop.f32.mrb[9].mxu0 }
 0x1f7   :  { %v835_v7 = vpop.f32.mrb[10].mxu0 }
 0x1f8   :  { %838 = vst [vmem:[%s4102_s7] sm:$0xff] %v833_v5  ;;  %v3001_v9 = vpop.f32.mrb[11].mxu0 }
 0x215   :  { %v2826_v11 = vpop.f32.mrb[12].mxu0 }
 0x216   :  { %v2827_v12 = vpop.f32.mrb[13].mxu0 }
 0x217   :  { %v2828_v14 = vadd.f32 %v2827_v12, %v2826_v11  ;;  %v2829_v15 = vpop.f32.mrb[14].mxu0  ;;  %v3252_v12 = vld [vmem:[%s4097_s5] sm:$0xff]  }
 0x218   :  { %v2830_v16 = vpop.f32.mrb[15].mxu0  ;;  %3023 = vmatpush3.bf16.msra.mxu0 %v3252_v12  ;;  %v3253_v15 = vld [vmem:[%s4097_s5 + $0x8] sm:$0xff]  }
 0x219   :  { %v1449_v17 = vadd.f32 %v2828_v14, %v1409_v10  ;;  %3024 = vmatprep.subr.bf16.mxu0 %v3260_v19  ;;  %v3254_v16 = vld [vmem:[%s4097_s5 + $0x10] sm:$0xff]  }
 0x21b   :  { %v1489_v18 = vadd.f32 %v3789_v13, %v1449_v17  ;;  %v3208_v13 = vld [vmem:[%s4095_s3 + $0xc8] sm:$0xff]   ;;  %v3255_v17 = vld [vmem:[%s4097_s5 + $0x18] sm:$0xff]  }
 0x21c   :  { %3025 = vmatpush3.bf16.msra.mxu0 %v3253_v15 }
 0x21d   :  { %3026 = vmatprep.subr.bf16.mxu0 %v3260_v19 }
 0x220   :  { %3027 = vmatpush3.bf16.msra.mxu0 %v3254_v16 }
 0x221   :  { %3028 = vmatprep.subr.bf16.mxu0 %v3260_v19 }
 0x224   :  { %3029 = vmatpush3.bf16.msra.mxu0 %v3255_v17 }
 0x225   :  { %3030 = vmatprep.subr.bf16.mxu0 %v3260_v19 }
 0x235   :  { %v2870_v20 = vpop.f32.mrb[16].mxu0 }
 0x236   :  { %v2871_v21 = vpop.f32.mrb[17].mxu0 }
 0x237   :  { %v2872_v22 = vadd.f32 %v2871_v21, %v2870_v20  ;;  %v2873_v23 = vpop.f32.mrb[18].mxu0  ;;  %v3257_v20 = vld [vmem:[%s4097_s5 + $0x28] sm:$0xff]   ;;  %v3258_v21 = vld [vmem:[%s4097_s5 + $0x30] sm:$0xff]  }
 0x238   :  { %v2874_v24 = vpop.f32.mrb[19].mxu0 }
 0x239   :  { %v1529_v25 = vadd.f32 %v2872_v22, %v1489_v18  ;;  %v3256_v18 = vld [vmem:[%s4097_s5 + $0x20] sm:$0xff]   ;;  %v3259_v22 = vld [vmem:[%s4097_s5 + $0x38] sm:$0xff]  }
 0x23a   :  { %3031 = vmatpush3.bf16.msra.mxu0 %v3256_v18 }
 0x23b   :  { %v1534_v27 = vmax.f32 %v1529_v25, 0.0  ;;  %3032 = vmatprep.subr.bf16.mxu0 %v3260_v19 }
 0x23d   :  { %v1535_v28 = vpack.c.bf16 %v1534_v27, %v1534_v27 }
 0x23e   :  { %3033 = vmatpush3.bf16.msra.mxu0 %v3257_v20 }
 0x23f   :  { %3019 = vmatmul.mubr.bf16.vlgmr.msra.gmra.mrb[16].mxu1 %v1535_v28  ;;  %3034 = vmatprep.subr.bf16.mxu0 %v3260_v19 }
 0x240   :  { %2908 = vmatpush3.bf16.msra.mxu1 %v3205_v4  ;;  %2255 = vmatprep.mubr.bf16.mxu1 %v1659_v8  ;;  %v2617_v4 = vld [vmem:[%s4099_s4] ss:$0 sm:$0xff] }
 0x241   :  { %2909 = vmatprep.subr.bf16.mxu1 %v3208_v13 }
 0x242   :  { %3035 = vmatpush3.bf16.msra.mxu0 %v3258_v21 }
 0x243   :  { %3036 = vmatprep.subr.bf16.mxu0 %v3260_v19 }
 0x244   :  { %2910 = vmatpush3.bf16.msra.mxu1 %v3209_v29 }
 0x245   :  { %2911 = vmatprep.subr.bf16.mxu1 %v3212_v30 }
 0x246   :  { %3037 = vmatpush3.bf16.msra.mxu0 %v3259_v22 }
 0x248   :  { %2912 = vmatpush3.bf16.msra.mxu1 %v3213_v31 }
 0x249   :  { %2913 = vmatprep.subr.bf16.mxu1 %v3216_v32 }
 0x24c   :  { %2914 = vmatpush3.bf16.msra.mxu1 %v3217_v33 }
 0x24d   :  { %2915 = vmatprep.subr.bf16.mxu1 %v3220_v34 }
 0x250   :  { %2916 = vmatpush3.bf16.msra.mxu1 %v3221_v35 }
 0x251   :  { %2917 = vmatprep.subr.bf16.mxu1 %v3224_v36 }
 0x254   :  { %2918 = vmatpush3.bf16.msra.mxu1 %v3225_v37 }
 0x255   :  { %2919 = vmatprep.subr.bf16.mxu1 %v3228_v38  ;;  %v2901_v0 = vpop.f32.mrb[20].mxu0 }
 0x256   :  { %v2902_v1 = vpop.f32.mrb[21].mxu0 }
 0x257   :  { %v2903_v3 = vadd.f32 %v2902_v1, %v2901_v0  ;;  %v2904_v5 = vpop.f32.mrb[22].mxu0 }
 0x258   :  { %2920 = vmatpush3.bf16.msra.mxu1 %v3229_v39  ;;  %v2905_v6 = vpop.f32.mrb[23].mxu0 }
 0x259   :  { %2921 = vmatprep.subr.bf16.mxu1 %v3232_v40  ;;  %v2218_v19 = vadd.f32 %v2903_v3, %v2617_v4 }
 0x25c   :  { %2922 = vmatpush3.bf16.msra.mxu1 %v3233_v41 }
 0x25d   :  { %2951 = vmatprep.subr.bf16.mxu1 %v3236_v43 }
 0x25f   :  { %2256 = vmatmul.mubr.bf16.vlgmr.msra.gmra.mrb[20].mxu1 %v1658_v45 }
 0x260   :  { %2952 = vmatpush3.bf16.msra.mxu1 %v3237_v46  ;;  %2335 = vmatprep.mubr.bf16.mxu1 %v1663_v47 }
 0x261   :  { %2953 = vmatprep.subr.bf16.mxu1 %v3238_v48 }
 0x264   :  { %2954 = vmatpush3.bf16.msra.mxu1 %v3239_v49 }
 0x265   :  { %2955 = vmatprep.subr.bf16.mxu1 %v3240_v50 }
 0x268   :  { %2956 = vmatpush3.bf16.msra.mxu1 %v3241_v51 }
 0x269   :  { %2957 = vmatprep.subr.bf16.mxu1 %v3242_v52 }
 0x26c   :  { %2958 = vmatpush3.bf16.msra.mxu1 %v3243_v53 }
 0x26d   :  { %2959 = vmatprep.subr.bf16.mxu1 %v3244_v54 }
 0x270   :  { %2960 = vmatpush3.bf16.msra.mxu1 %v3245_v55 }
 0x271   :  { %2961 = vmatprep.subr.bf16.mxu1 %v3246_v56 }
 0x274   :  { %2962 = vmatpush3.bf16.msra.mxu1 %v3247_v57 }
 0x275   :  { %2963 = vmatprep.subr.bf16.mxu1 %v3248_v58  ;;  %v2945_v7 = vpop.f32.mrb[24].mxu0 }
 0x276   :  { %v2946_v9 = vpop.f32.mrb[25].mxu0 }
 0x277   :  { %v2947_v10 = vadd.f32 %v2946_v9, %v2945_v7  ;;  %v2948_v11 = vpop.f32.mrb[26].mxu0 }
 0x278   :  { %2964 = vmatpush3.bf16.msra.mxu1 %v3249_v59  ;;  %v2949_v14 = vpop.f32.mrb[27].mxu0 }
 0x279   :  { %2965 = vmatprep.subr.bf16.mxu1 %v3250_v60 }
 0x27c   :  { %2966 = vmatpush3.bf16.msra.mxu1 %v3251_v61 }
 0x27f   :  { %2336 = vmatmul.mubr.bf16.vlgmr.msra.gmra.mrb[24].mxu1 %v1662_v63 }
 0x312   :  { %v1641_v23 = vpop.f32.mrb[16].mxu1 }
 0x313   :  { %v1642_v24 = vadd.f32 %v3939_v2, %v1641_v23  ;;  %v3020_v25 = vpop.f32.mrb[17].mxu1 }
 0x314   :  { %v1644_v26 = vpop.f32.mrb[18].mxu1 }
 0x315   :  { %1647 = vst [vmem:[%s4103_s8] sm:$0xff] %v1642_v24  ;;  %v3021_v27 = vpop.f32.mrb[19].mxu1 }
 0x332   :  { %v2923_v8 = vpop.f32.mrb[20].mxu1 }
 0x333   :  { %v2924_v28 = vpop.f32.mrb[21].mxu1 }
 0x334   :  { %v2925_v13 = vadd.f32 %v2924_v28, %v2923_v8  ;;  %v2926_v29 = vpop.f32.mrb[22].mxu1 }
 0x335   :  { %v2927_v30 = vpop.f32.mrb[23].mxu1 }
 0x336   :  { %v2258_v31 = vadd.f32 %v2925_v13, %v2218_v19 }
 0x338   :  { %v2298_v32 = vadd.f32 %v2947_v10, %v2258_v31 }
 0x352   :  { %v2967_v33 = vpop.f32.mrb[24].mxu1 }
 0x353   :  { %v2968_v34 = vpop.f32.mrb[25].mxu1 }
 0x354   :  { %v2969_v35 = vadd.f32 %v2968_v34, %v2967_v33  ;;  %v2970_v36 = vpop.f32.mrb[26].mxu1 }
 0x355   :  { %v2971_v37 = vpop.f32.mrb[27].mxu1 }
 0x356   :  { %v2338_v38 = vadd.f32 %v2969_v35, %v2298_v32 }
 0x358   :  { %v2343_v39 = vmax.f32 %v2338_v38, 0.0 }
 0x35a   :  { %v2344_v40 = vpack.c.bf16 %v2343_v39, %v2343_v39 }
 0x35c   :  { %3039 = vmatmul.mubr.bf16.vlgmr.msra.gmra.mrb[28].mxu0 %v2344_v40 }
 0x42f   :  { %v2450_v41 = vpop.f32.mrb[28].mxu0 }
 0x430   :  { %v2451_v42 = vadd.f32 %v3939_v2, %v2450_v41  ;;  %v3040_v43 = vpop.f32.mrb[29].mxu0 }
 0x431   :  { %v2453_v44 = vpop.f32.mrb[30].mxu0 }
 0x432   :  { %2456 = vst [vmem:[%s4104_s9] sm:$0xff] %v2451_v42  ;;  %v3041_v45 = vpop.f32.mrb[31].mxu0 }

</bundles_post_ra>
